<compile_context>
chip_gen: v7x
topology: tpu7x:2x2x1
jax: 0.10.0
libtpu: 0.0.40
codegen_flags: <defaults>
</compile_context>

<pallas_src>
import jax
import jax.numpy as jnp
import numpy as np
from jax.experimental import pallas as pl
from jax.experimental.pallas import tpu as pltpu

EPS = 1e-5
LANES = 128
BF16_SUBLANES = 16  # sublane tile for bf16 operands


def _round_up(x, m):
    return (x + m - 1) // m * m


# ---------- pass 1: conv matmul (packed layout) + per-tile sum / sum-of-squares ---------
def _conv_stats_kernel(p_ref, w_ref, conv_ref, stats_ref):
    # p_ref:     (tile_r, G*K)  bf16 im2col patches, G output pixels packed per row
    # w_ref:     (G*K, CW)      bf16 block-diagonal folded conv weights
    # conv_ref:  (tile_r, CW)   f32 packed conv output (every lane real -> unmasked vst)
    # stats_ref: (2, CW)        this tile's [sum, sum_of_squares] partials per packed lane
    a = jnp.dot(p_ref[...], w_ref[...], preferred_element_type=jnp.float32)
    conv_ref[...] = a
    stats_ref[0:1, :] = jnp.sum(a, axis=0, keepdims=True)
    stats_ref[1:2, :] = jnp.sum(a * a, axis=0, keepdims=True)


# ---------- pass 2: elementwise  y = conv * scale + shift  (all lane-dense) -------------
def _bn_apply_kernel(conv_ref, scale_ref, shift_ref, o_ref):
    o_ref[...] = conv_ref[...] * scale_ref[...] + shift_ref[...]


def conv2d_batchnorm(x_nchw, w_oihw, gamma, beta, *, padding=1, tile_m=2048):
    """Conv2d(KHxKW, stride=1, pad=padding, bias=False) + train-mode BatchNorm2d.

    x_nchw: (N, Cin, H, W);  w_oihw: (Cout, Cin, KH, KW).  Returns (N, Cout, H, W) f32.
    tile_m = output pixels per grid step (sweep per chip); clamped so >= 2 grid tiles
    when M allows (keeps both v7x TensorCores busy).
    """
    N, Cin, H, W = x_nchw.shape
    Cout, _, KH, KW = w_oihw.shape
    H_out = H + 2 * padding - (KH - 1)
    W_out = W + 2 * padding - (KW - 1)
    K = KH * KW * Cin
    M = N * H_out * W_out

    # ---- channel packing: G output pixels share one 128-lane row ------------------------
    if Cout < LANES and LANES % Cout == 0:
        G, Cq = LANES // Cout, Cout            # no padded lanes at all
    else:
        G, Cq = 1, _round_up(Cout, LANES)      # fallback: zero-pad channels to lane width
    CW = G * Cq                                 # packed lane width (multiple of 128)
    GK = G * K

    # ---- row tiling: big tiles, but keep >= 2 grid steps when possible ------------------
    row_align = G * BF16_SUBLANES
    tile_m_eff = min(tile_m, max(row_align, _round_up((M + 1) // 2, row_align)))
    tile_m_eff = _round_up(tile_m_eff, row_align)
    M_pad = _round_up(M, tile_m_eff)
    num_tiles = M_pad // tile_m_eff
    tile_r = tile_m_eff // G                    # packed rows per grid step
    Mr = M_pad // G

    # -------- plain-JAX glue: layout, zero-pad, im2col, block-diagonal weight fold -------
    # TODO(synk): keep NHWC end-to-end if the surrounding model allows (drops both
    # transposes), and/or build im2col in-kernel from an NHWC halo slab
    # (memory_space=pl.ANY + pltpu.make_async_copy) to cut conv-input HBM reads ~9x.
    x_nhwc = jnp.transpose(x_nchw.astype(jnp.bfloat16), (0, 2, 3, 1))
    x_pad = jnp.pad(x_nhwc, ((0, 0), (padding, padding), (padding, padding), (0, 0)))
    patches = jnp.concatenate(
        [x_pad[:, kh:kh + H_out, kw:kw + W_out, :]
         for kh in range(KH) for kw in range(KW)],
        axis=-1,
    ).reshape(M, K)
    if M_pad != M:
        # Zero rows conv to exactly 0 (bias=False): they contribute nothing to the
        # sum / sum-of-squares partials and are sliced off at the end.
        patches = jnp.pad(patches, ((0, M_pad - M), (0, 0)))
    patches = patches.reshape(Mr, GK)           # contiguous reshape: G pixels per row

    w_mat = jnp.transpose(w_oihw, (2, 3, 1, 0)).reshape(K, Cout).astype(jnp.float32)
    w_mat = jnp.pad(w_mat, ((0, 0), (0, Cq - Cout)))
    # Block-diagonal fold: out[r, g*Cq + c] = conv(pixel r*G + g, channel c).  Same MXU
    # work as padding Cout->128, but every output lane is real.
    w_bd = jnp.kron(jnp.eye(G, dtype=jnp.float32), w_mat).astype(jnp.bfloat16)  # (GK, CW)

    cparams = pltpu.CompilerParams(
        dimension_semantics=("parallel",),      # row tiles independent in both passes
        vmem_limit_bytes=32 * 1024 * 1024,      # explicit budget, safe on v7x's 64 MiB
    )

    # ---------------- pass 1: conv matmul -> packed intermediate + BN partials -----------
    conv_packed, stats = pl.pallas_call(
        _conv_stats_kernel,
        out_shape=(jax.ShapeDtypeStruct((Mr, CW), jnp.float32),
                   jax.ShapeDtypeStruct((num_tiles, 2, CW), jnp.float32)),
        grid=(num_tiles,),
        in_specs=[
            pl.BlockSpec((tile_r, GK), lambda i: (i, 0)),
            pl.BlockSpec((GK, CW), lambda i: (0, 0)),
        ],
        out_specs=(
            pl.BlockSpec((tile_r, CW), lambda i: (i, 0)),
            pl.BlockSpec((None, 2, CW), lambda i: (i, 0, 0)),
        ),
        compiler_params=cparams,
    )(patches, w_bd)

    # Tiny cross-tile + cross-group reduction and per-channel scale/shift in plain JAX.
    # (f32 E[x^2]-E[x]^2 is fine at these magnitudes; switch to a centered/Welford
    #  combine of the per-tile partials if N*H*W or activation magnitudes grow.)
    totals = jnp.sum(stats, axis=0).reshape(2, G, Cq)[:, :, :Cout].sum(axis=1)  # (2, Cout)
    mean = totals[0] / M                                   # biased, training-mode stats
    var = jnp.maximum(totals[1] / M - mean * mean, 0.0)
    scale_c = gamma.astype(jnp.float32) * jax.lax.rsqrt(var + EPS)
    shift_c = beta.astype(jnp.float32) - mean * scale_c
    scale_q = jnp.zeros((Cq,), jnp.float32).at[:Cout].set(scale_c)  # padded lanes -> 0
    shift_q = jnp.zeros((Cq,), jnp.float32).at[:Cout].set(shift_c)
    scale_p = jnp.tile(scale_q, G).reshape(1, CW)
    shift_p = jnp.tile(shift_q, G).reshape(1, CW)

    # ---------------- pass 2: y = conv*scale + shift over the packed intermediate --------
    y_packed = pl.pallas_call(
        _bn_apply_kernel,
        out_shape=jax.ShapeDtypeStruct((Mr, CW), jnp.float32),
        grid=(num_tiles,),
        in_specs=[
            pl.BlockSpec((tile_r, CW), lambda i: (i, 0)),
            pl.BlockSpec((1, CW), lambda i: (0, 0)),
            pl.BlockSpec((1, CW), lambda i: (0, 0)),
        ],
        out_specs=pl.BlockSpec((tile_r, CW), lambda i: (i, 0)),
        compiler_params=cparams,
    )(conv_packed, scale_p, shift_p)

    # Unpack: contiguous reshape (free); the slice is a no-op when M_pad==M and Cq==Cout.
    y = y_packed.reshape(M_pad, Cq)[:M, :Cout]
    out_nhwc = y.reshape(N, H_out, W_out, Cout)
    return jnp.transpose(out_nhwc, (0, 3, 1, 2))  # back to NCHW to match the module


if __name__ == "__main__":
    key = jax.random.PRNGKey(0)
    k_x, k_w = jax.random.split(key)

    N, Cin, Cout, H, W, KSZ = 2, 4, 8, 16, 16, 3

    # Input
    x = jax.random.normal(k_x, (N, Cin, H, W), dtype=jnp.float32)

    # Conv weight: kaiming_normal_ (fan_in = Cin*K*K, gain = sqrt(2)), bias=False.
    fan_in = Cin * KSZ * KSZ
    w = jax.random.normal(k_w, (Cout, Cin, KSZ, KSZ), dtype=jnp.float32) * np.sqrt(2.0 / fan_in)

    # BatchNorm2d affine params at nn.BatchNorm2d defaults.
    gamma = jnp.ones((Cout,), jnp.float32)
    beta = jnp.zeros((Cout,), jnp.float32)

    out = conv2d_batchnorm(x, w, gamma, beta, padding=1)
    out = jax.block_until_ready(out)

    # Pure-JAX f32 reference (module semantics).
    x_nhwc = jnp.transpose(x, (0, 2, 3, 1))
    w_hwio = jnp.transpose(w, (2, 3, 1, 0))
    conv_ref = jax.lax.conv_general_dilated(
        x_nhwc, w_hwio, window_strides=(1, 1), padding=((1, 1), (1, 1)),
        dimension_numbers=("NHWC", "HWIO", "NHWC"))
    mu = conv_ref.mean(axis=(0, 1, 2))
    var = ((conv_ref - mu) ** 2).mean(axis=(0, 1, 2))
    bn_ref = (conv_ref - mu) * jax.lax.rsqrt(var + EPS) * gamma + beta
    ref = jnp.transpose(bn_ref, (0, 3, 1, 2))

    # bf16 MXU inputs (f32 accumulation) -> tolerance loosened vs the pure-f32 reference.
    np.testing.assert_allclose(np.asarray(out), np.asarray(ref), atol=5e-2, rtol=5e-2)
    assert out.shape == (N, Cout, H, W)
    print("KERNEL_OK")
</pallas_src>

<mosaic_0001>
module attributes {stable_mosaic.version = 11 : i64} {
  func.func @_conv_stats_kernel(%arg0: i32, %arg1: memref<16x576xbf16, #tpu.memory_space<vmem>>, %arg2: memref<576x128xbf16, #tpu.memory_space<vmem>>, %arg3: memref<16x128xf32, #tpu.memory_space<vmem>>, %arg4: memref<1x2x128xf32, #tpu.memory_space<vmem>>) attributes {dimension_semantics = [#tpu.dimension_semantics<parallel>], iteration_bounds = array<i64: 2>, scalar_prefetch = 0 : i64, scratch_operands = 0 : i64, tpu.core_type = #tpu.core_type<tc>, window_params = [{transform_indices = @transform_0, window_bounds = array<i64: 16, 576>}, {pipeline_mode = #tpu.pipeline_mode<synchronous>, transform_indices = @transform_1, window_bounds = array<i64: 576, 128>}, {transform_indices = @transform_2, window_bounds = array<i64: 16, 128>}, {transform_indices = @transform_3, window_bounds = array<i64: 1, 2, 128>}]} {
    %c0 = arith.constant 0 : index
    %c0_0 = arith.constant 0 : index
    %0 = vector.load %arg1[%c0, %c0_0] : memref<16x576xbf16, #tpu.memory_space<vmem>>, vector<16x576xbf16>
    %c0_1 = arith.constant 0 : index
    %c0_2 = arith.constant 0 : index
    %1 = vector.load %arg2[%c0_1, %c0_2] : memref<576x128xbf16, #tpu.memory_space<vmem>>, vector<576x128xbf16>
    %cst = arith.constant dense<0.000000e+00> : vector<16x128xf32>
    %2 = tpu.matmul %0, %1, %cst {dimension_numbers = #tpu.dot_dimension_numbers<[1], [0], [0], [1], [0, 0, 1, 1], [], []>} : vector<16x576xbf16>, vector<576x128xbf16>, vector<16x128xf32> -> vector<16x128xf32>
    %c0_3 = arith.constant 0 : index
    %c0_4 = arith.constant 0 : index
    %3 = vector.load %arg3[%c0_3, %c0_4] : memref<16x128xf32, #tpu.memory_space<vmem>>, vector<16x128xf32>
    tpu.vector_store %arg3[%c0_3, %c0_4], %2 {strides = array<i32>} : memref<16x128xf32, #tpu.memory_space<vmem>>, vector<16x128xf32>,
    %cst_5 = arith.constant dense<0.000000e+00> : vector<128xf32>
    %4 = vector.multi_reduction <add>, %2, %cst_5 [0] : vector<16x128xf32> to vector<128xf32>
    %5 = vector.shape_cast %4 : vector<128xf32> to vector<1x128xf32>
    %c0_6 = arith.constant 0 : index
    %c0_7 = arith.constant 0 : index
    %c0_8 = arith.constant 0 : index
    %6 = vector.load %arg4[%c0_6, %c0_7, %c0_8] : memref<1x2x128xf32, #tpu.memory_space<vmem>>, vector<1x1x128xf32>
    %7 = vector.shape_cast %6 : vector<1x1x128xf32> to vector<1x128xf32>
    %8 = vector.shape_cast %5 : vector<1x128xf32> to vector<1x1x128xf32>
    tpu.vector_store %arg4[%c0_6, %c0_7, %c0_8], %8 {strides = array<i32>} : memref<1x2x128xf32, #tpu.memory_space<vmem>>, vector<1x1x128xf32>,
    %9 = arith.mulf %2, %2 : vector<16x128xf32>
    %cst_9 = arith.constant dense<0.000000e+00> : vector<128xf32>
    %10 = vector.multi_reduction <add>, %9, %cst_9 [0] : vector<16x128xf32> to vector<128xf32>
    %11 = vector.shape_cast %10 : vector<128xf32> to vector<1x128xf32>
    %c0_10 = arith.constant 0 : index
    %c1 = arith.constant 1 : index
    %c0_11 = arith.constant 0 : index
    %12 = vector.load %arg4[%c0_10, %c1, %c0_11] : memref<1x2x128xf32, #tpu.memory_space<vmem>>, vector<1x1x128xf32>
    %13 = vector.shape_cast %12 : vector<1x1x128xf32> to vector<1x128xf32>
    %14 = vector.shape_cast %11 : vector<1x128xf32> to vector<1x1x128xf32>
    tpu.vector_store %arg4[%c0_10, %c1, %c0_11], %14 {strides = array<i32>} : memref<1x2x128xf32, #tpu.memory_space<vmem>>, vector<1x1x128xf32>,
    return
  }
  func.func @transform_0(%arg0: i32) -> (i32, i32) {
    %c0_i32 = arith.constant 0 : i32
    %c0_i32_0 = arith.constant 0 : i32
    return %arg0, %c0_i32 : i32, i32
  }
  func.func @transform_1(%arg0: i32) -> (i32, i32) {
    %c0_i32 = arith.constant 0 : i32
    %c0_i32_0 = arith.constant 0 : i32
    %c0_i32_1 = arith.constant 0 : i32
    return %c0_i32, %c0_i32_0 : i32, i32
  }
  func.func @transform_2(%arg0: i32) -> (i32, i32) {
    %c0_i32 = arith.constant 0 : i32
    %c0_i32_0 = arith.constant 0 : i32
    return %arg0, %c0_i32 : i32, i32
  }
  func.func @transform_3(%arg0: i32) -> (i32, i32, i32) {
    %c0_i32 = arith.constant 0 : i32
    %c0_i32_0 = arith.constant 0 : i32
    %c0_i32_1 = arith.constant 0 : i32
    return %arg0, %c0_i32, %c0_i32_0 : i32, i32, i32
  }
}

</mosaic_0001>

<bundles_post_ra>
// kernel: tpu_custom_call.1
= control target key start
LH: loop header
LB: loop body
LE: loop exit
PB: predicated region body
PF: predicated region fallthrough
CT: control target
= control target key end

     0   :  { %9 = vsyncpa [#allocation3], 0  ;;  %s1504_s0 = inlined_call_operand.hbm [shape: bf16[32,576], index: 0, kind: input, shape index: {}]   ;;  %s1505_s1 = inlined_call_operand.hbm [shape: bf16[576,128], index: 1, kind: input, shape index: {}]   ;;  %s1506_s2 = inlined_call_operand.hbm [shape: f32[32,128], index: 2, kind: output, shape index: {0}]   ;;  %s1507_s3 = inlined_call_operand.hbm [shape: f32[2,2,128], index: 3, kind: output, shape index: {1}]  }
   0x1   :  { %11 = vsyncpa [#allocation3 + $0x1], 0 }
   0x2   :  { %12 = vsyncpa [#allocation6], 0 }
   0x3   :  { %13 = vsyncpa [#allocation4], 0 }
   0x4   :  { %15 = vsyncpa [#allocation4 + $0x1], 0 }
   0x5   :  { %16 = vsyncpa [#allocation9], 0 }
   0x6   :  { %18 = vsyncpa [#allocation9 + $0x1], 0  ;;  %s1264_s12 = smov 0   ;;  %s1266_s13 = smov 0  }
   0x7   :  { %s1268_s14 = smov 0   ;;  %s1270_s15 = smov 0  }
   0x8 LB: > { %s1285_s16 = sadd.s32 4294967295, %s1230_s15   ;;  %s832_s17 = sadd.s32 4294967294, %s1230_s15   ;;  %s1230_s15 = sphi %s1270_s15, %s1527_s15   ;;  %s1226_s14 = sphi %s1268_s14, %s1526_s14   ;;  %s1222_s13 = sphi %s1266_s13, %s1525_s13   ;;  %s1218_s12 = sphi %s1264_s12, %s1524_s12  }
   0x9   : > { %p44_p0 = scmp.ne.s32.totalorder %s1222_s13, %s1218_s12  ;;  %p1508_p1 = scmp.eq.s32.totalorder %s1285_s16, 0 }
   0xa   : > { %p95_p3 = scmp.eq.s32.totalorder %s832_s17, 1  ;;  %p833_p5 = scmp.ge.s32.totalorder %s1230_s15, 1 }
   0xb   : > { %p1294_p4 = por %p1508_p1, %p44_p0  ;;  %p128_p7 = scmp.lt.s32.totalorder %s1230_s15, 3 }
   0xc   : > { %p1299_p6 = por %p95_p3, %p44_p0  ;;  %s1232_s21 = smov [#allocation5]  }
   0xd   : > { %s1511_s18 = scalar_select %p1294_p4, 1, 0 }
   0xe   : > { %s1512_s19 = scalar_select %p1299_p6, 1, 0 }
   0xf   : > { %p1304_p8 = pnand %p833_p5, %p128_p7  ;;  %s140_s22 = sshll.u32 %s1232_s21, 4  ;;  %s1308_s22 = int_to_ptr.vmem [resolvable:$true] %s140_s22 }
  0x10   : > { %s1320_s24 = sadd.s32 1, %s1230_s15   ;;  %s31_s25 = sadd.s32 1, %s1226_s14 }
  0x11   : > { %s1513_s20 = scalar_select %p1304_p8, 1, 0 }
  0x12   : > { %p967_p9 = pneg %p1304_p8  ;;  %s28_s26 = ssub.s32 %s1230_s15, %s1320_s24 }
  0x13   : > { %s1070_s29 = scalar_lea.hbm %s1505_s1, 4608 }
  0x14   : > { %p1315_p11 = pnand %p967_p9, %p1508_p1  ;;  %p1071_p12 = scmp.ne.s32.totalorder %s1505_s1, %s1070_s29 }
  0x15   : > { %p1077_p5 = scmp.lt.u32.totalorder %s1070_s29, %s1505_s1 }
  0x16   : > { %p1072_p13 = pneg %p1315_p11 }
  0x18   : > { %p1073_p0 = pnand %p1072_p13, %p1071_p12 }
  0x1a   : > { %p1074_p3 = pneg %p1073_p0 }
  0x1c   : > { %p1079_p7 = pnand %p1077_p5, %p1074_p3 }
  0x1e   : > { %1082 = shalt.err (!%p1079_p7)
}
  0x1f   : > { %s1083_s7 = scalar_lea.vmem %s1308_s22, 4608  ;;  %p1091_p2 = scmp.lt.s32.totalorder %s1308_s22, %s1308_s22 }
  0x20   : > { %p1084_p9 = scmp.ne.s32.totalorder %s1308_s22, %s1083_s7  ;;  %p1092_p6 = scmp.lt.s32.totalorder %s1083_s7, %s1083_s7 }
  0x22   : > { %p1086_p10 = pnand %p1084_p9, %p1072_p13  ;;  %p1093_p4 = por %p1092_p6, %p1091_p2 }
  0x24   : > { %p1087_p1 = pneg %p1086_p10 }
  0x26   : > { %p1094_p8 = pnand %p1093_p4, %p1087_p1 }
  0x28   : > { %1097 = shalt.err (!%p1094_p8)
}
  0x29   : > { %s1233_s8 = smov 64   ;;  %s1234_s9 = smov 4  }
  0x2a   : > { %970 = dma.hbm_to_vmem [thread:$0]  (!%p1315_p11), %s1505_s1, 4608, %s1308_s22, [#allocation6], %s1233_s8, %s1233_s8, %s1234_s9  }
  0x2b   : > { %p29_p2 = scmp.eq.s32.totalorder %s28_s26, 0  ;;  %p38_p1 = scmp.ne.s32.totalorder %s1226_s14, %s1222_s13 }
  0x2c   : > { %p39_p4 = scmp.eq.s32.totalorder %s1230_s15, 0  ;;  %p983_p6 = scmp.lt.s32.totalorder %s1230_s15, 2 }
  0x2d   : > { %s1351_s17 = scalar_select %p29_p2, %s1226_s14, %s31_s25  }
  0x2e   : > { %p40_p8 = por %p39_p4, %p38_p1  ;;  %p1515_p10 = scmp.eq.s32.totalorder %s1285_s16, 1 }
  0x2f   : > { %s154_s27 = sand.u32 1, %s1226_s14   ;;  %s955_s28 = smul.u32 640, %s1230_s15 }
  0x30   : > { %p1355_p12 = por %p1515_p10, %p38_p1  ;;  %s954_s29 = smul.u32 40, %s154_s27 }
  0x31   : > { %s1364_s4 = scalar_lea.hbm %s1504_s0, %s955_s28  ;;  %p1366_p11 = pnand %p983_p6, %p40_p8 }
  0x32   : > { %s158_s25 = scalar_lea.vmem [#allocation2], %s954_s29  ;;  %s1372_s5 = scalar_lea.sflag [#allocation3], %s154_s27 }
  0x33   : > { %s166_s26 = sshll.u32 %s158_s25, 4  ;;  %s1098_s6 = scalar_lea.hbm %s1364_s4, 640  ;;  %s1370_s26 = int_to_ptr.vmem [resolvable:$true] %s166_s26 }
  0x34   : > { %p1099_p13 = scmp.ne.s32.totalorder %s1364_s4, %s1098_s6  ;;  %p1100_p0 = pneg %p1366_p11 }
  0x35   : > { %s1103_s9 = scalar_lea.hbm %s1504_s0, 1280  ;;  %p1104_p7 = scmp.lt.u32.totalorder %s1364_s4, %s1504_s0 }
  0x36   : > { %p1101_p3 = pnand %p1100_p0, %p1099_p13  ;;  %p1105_p9 = scmp.lt.u32.totalorder %s1103_s9, %s1098_s6 }
  0x37   : > { %p1107_p1 = scmp.lt.u32.totalorder %s1098_s6, %s1364_s4 }
  0x38   : > { %p1102_p5 = pneg %p1101_p3  ;;  %p1106_p2 = por %p1105_p9, %p1104_p7 }
  0x3a   : > { %p1108_p4 = por %p1107_p1, %p1106_p2 }
  0x3c   : > { %p1109_p6 = pnand %p1108_p4, %p1102_p5 }
  0x3e   : > { %1112 = shalt.err (!%p1109_p6)
}
  0x3f   : > { %s1113_s27 = scalar_lea.vmem %s1370_s26, 640  ;;  %s1235_s28 = smov [#allocation2]  }
  0x40   : > { %p1114_p8 = scmp.ne.s32.totalorder %s1370_s26, %s1113_s27  ;;  %s1118_s29 = sshll.u32 %s1235_s28, 4  ;;  %s1119_s29 = int_to_ptr.vmem [resolvable:$false] %s1118_s29 }
  0x41   : > { %s1120_s23 = scalar_lea.vmem %s1119_s29, 1280  ;;  %p1121_p3 = scmp.lt.s32.totalorder %s1370_s26, %s1119_s29 }
  0x42   : > { %p1116_p10 = pnand %p1114_p8, %p1100_p0  ;;  %p1122_p7 = scmp.lt.s32.totalorder %s1120_s23, %s1113_s27 }
  0x44   : > { %p1117_p13 = pneg %p1116_p10  ;;  %p1123_p9 = por %p1122_p7, %p1121_p3 }
  0x46   : > { %p1124_p2 = pnand %p1123_p9, %p1117_p13 }
  0x48   : > { %1127 = shalt.err (!%p1124_p2)
}
  0x49   : > { %s1236_s30 = smov 320   ;;  %s1237_s25 = smov 20  }
  0x4a   : > { %974 = dma.hbm_to_vmem [thread:$0]  (!%p1366_p11), %s1364_s4, 640, %s1370_s26, %s1372_s5, %s1236_s30, %s1236_s30, %s1237_s25  }
  0x4b   : > { %p1518_p0 = scmp.ne.s32.totalorder %s1513_s20, 0 }
  0x4c   : > { %s1403_s6 = sand.u32 (!%p1518_p0), 1, %s1222_s13   ;;  %p1519_p5 = scmp.ne.s32.totalorder (!%p1518_p0), %s1511_s18, 0 }
  0x4d   : > { %178 = sbr.rel (%p1518_p0) target bundleno = 395 (0x18b), region = 28  ;;  %s181_s8 = scalar_lea.sflag (!%p1518_p0), [#allocation3], %s1403_s6 }
  0x4e   : > { %s956_s7 = smul.u32 (!%p1518_p0), 40, %s1403_s6 }
  0x50   : > { %s1407_s9 = scalar_lea.vmem (!%p1518_p0), [#allocation2], %s956_s7 }
  0x54   : > { %1201 = dma.done.wait (%p1519_p5), %s181_s8, 640  }
  0x55   : > { %1203 = vsyncadd (%p1519_p5), %s181_s8, 4294966656  ;;  %p1520_p11 = scmp.eq.s32.totalorder %s1285_s16, 0 }
  0x57   : > { %1205 = dma.done.wait (%p1520_p11), [#allocation6], 4608   ;;  %p1521_p1 = pmov %p1520_p11 }
  0x58   : > { %v1027_v0 = vld [vmem:[#allocation5 + $0x40] sm:$0xff]   ;;  %v1031_v4 = vld [vmem:[#allocation5 + $0x48] sm:$0xff]   ;;  %v1035_v8 = vld [vmem:[#allocation5 + $0x50] sm:$0xff]   ;;  %v1238_v34 = vmov 0.0   ;;  %vm1239_vm0 = vmmov 0   ;;  %vm538_vm1 = vcmask 523264  }
  0x59   : > { %1207 = vsyncadd (%p1521_p1), [#allocation6], 4294962688  ;;  %v1028_v1 = vld [vmem:[#allocation5 + $0xc0] sm:$0xff]   ;;  %893 = vmatprep.subr.bf16.mxu0 %v1027_v0  ;;  %v1032_v5 = vld [vmem:[#allocation5 + $0xc8] sm:$0xff]   ;;  %s841_s18 = sshll.u32 %s1403_s6, 4  ;;  %s892_s22 = sshll.u32 %s1285_s16, 8 }
  0x5a   : > { %v1029_v2 = vld [vmem:[#allocation5] sm:$0xff]   ;;  %915 = vmatprep.subr.bf16.mxu1 %v1028_v1  ;;  %v1033_v6 = vld [vmem:[#allocation5 + $0x8] sm:$0xff]   ;;  %v1036_v9 = vld [vmem:[#allocation5 + $0xd0] sm:$0xff]   ;;  %s208_s20 = scalar_lea.vmem [#allocation7], %s841_s18  ;;  %s1429_s10 = scalar_lea.hbm %s1506_s2, %s892_s22 }
  0x5b   : > { %v1030_v3 = vld [vmem:[#allocation5 + $0x80] sm:$0xff]   ;;  %894 = vmatpush3.bf16.msra.mxu0 %v1029_v2  ;;  %v1034_v7 = vld [vmem:[#allocation5 + $0x88] sm:$0xff]   ;;  %v1037_v10 = vld [vmem:[#allocation5 + $0x10] sm:$0xff]   ;;  %s704_s4 = sshll.u32 %s208_s20, 4  ;;  %s686_s11 = scalar_lea.sflag [#allocation4], %s1403_s6  ;;  %s1424_s4 = int_to_ptr.vmem [resolvable:$true] %s704_s4 }
  0x5c   : > { %916 = vmatpush3.bf16.msra.mxu1 %v1030_v3  ;;  %895 = vmatprep.subr.bf16.mxu0 %v1031_v4  ;;  %v1038_v11 = vld [vmem:[#allocation5 + $0x90] sm:$0xff]   ;;  %v1039_v12 = vld [vmem:[#allocation5 + $0x58] sm:$0xff]   ;;  %v1043_v16 = vld [vmem:[#allocation5 + $0x60] sm:$0xff]   ;;  %s1128_s27 = scalar_lea.vmem %s1424_s4, 256  ;;  %s1240_s28 = smov [#allocation7]  }
  0x5d   : > { %917 = vmatprep.subr.bf16.mxu1 %v1032_v5  ;;  %v1040_v13 = vld [vmem:[#allocation5 + $0xd8] sm:$0xff]   ;;  %v1044_v17 = vld [vmem:[#allocation5 + $0xe0] sm:$0xff]   ;;  %v1047_v20 = vld [vmem:[#allocation5 + $0x68] sm:$0xff]   ;;  %p1129_p4 = scmp.ne.s32.totalorder %s1424_s4, %s1128_s27  ;;  %s1132_s29 = sshll.u32 %s1240_s28, 4  ;;  %s1133_s29 = int_to_ptr.vmem [resolvable:$false] %s1132_s29 }
  0x5e   : > { %v1041_v14 = vld [vmem:[#allocation5 + $0x18] sm:$0xff]   ;;  %v1045_v18 = vld [vmem:[#allocation5 + $0x20] sm:$0xff]   ;;  %v1048_v21 = vld [vmem:[#allocation5 + $0xe8] sm:$0xff]   ;;  %s1134_s23 = scalar_lea.vmem %s1133_s29, 512  ;;  %p1135_p10 = scmp.lt.s32.totalorder %s1424_s4, %s1133_s29 }
  0x5f   : > { %896 = vmatpush3.bf16.msra.mxu0 %v1033_v6  ;;  %v1042_v15 = vld [vmem:[#allocation5 + $0x98] sm:$0xff]   ;;  %v1046_v19 = vld [vmem:[#allocation5 + $0xa0] sm:$0xff]   ;;  %v1049_v22 = vld [vmem:[#allocation5 + $0x28] sm:$0xff]   ;;  %p1130_p6 = pnand %p1129_p4, %p1355_p12  ;;  %p1136_p13 = scmp.lt.s32.totalorder %s1134_s23, %s1128_s27 }
  0x60   : > { %918 = vmatpush3.bf16.msra.mxu1 %v1034_v7  ;;  %897 = vmatprep.subr.bf16.mxu0 %v1035_v8  ;;  %v1050_v23 = vld [vmem:[#allocation5 + $0xa8] sm:$0xff]   ;;  %v1051_v24 = vld [vmem:[#allocation5 + $0x70] sm:$0xff]   ;;  %v1055_v28 = vld [vmem:[#allocation5 + $0x78] sm:$0xff]  }
  0x61   : > { %919 = vmatprep.subr.bf16.mxu1 %v1036_v9  ;;  %v1052_v25 = vld [vmem:[#allocation5 + $0xf0] sm:$0xff]   ;;  %v1056_v29 = vld [vmem:[#allocation5 + $0xf8] sm:$0xff]   ;;  %v1065_v37 = vld [vmem:[#allocation5 + $0x100] sm:$0xff]   ;;  %p1131_p8 = pneg %p1130_p6  ;;  %p1137_p3 = por %p1136_p13, %p1135_p10 }
  0x62   : > { %v1053_v26 = vld [vmem:[#allocation5 + $0x30] sm:$0xff]   ;;  %v1057_v30 = vld [vmem:[#allocation5 + $0x38] sm:$0xff]   ;;  %v1066_v38 = vld [vmem:[#allocation5 + $0x108] sm:$0xff]  }
  0x63   : > { %898 = vmatpush3.bf16.msra.mxu0 %v1037_v10  ;;  %v1054_v27 = vld [vmem:[#allocation5 + $0xb0] sm:$0xff]   ;;  %v1058_v31 = vld [vmem:[#allocation5 + $0xb8] sm:$0xff]   ;;  %p1138_p7 = pnand %p1137_p3, %p1131_p8 }
  0x64   : > { %920 = vmatpush3.bf16.msra.mxu1 %v1038_v11  ;;  %899 = vmatprep.subr.bf16.mxu0 %v1039_v12  ;;  %v1059_v32 = vld [vmem:[%s1407_s9] ss:$20 sps:$4 sm:$0xff]   ;;  %v1061_v33 = vld [vmem:[%s1407_s9 + $0x4] ss:$20 sps:$4 sm:$0xff]   ;;  %v1062_v35 = vld [vmem:[%s1407_s9 + $0x8] ss:$20 sps:$4 sm:$0xff]  }
  0x65   : > { %921 = vmatprep.subr.bf16.mxu1 %v1040_v13  ;;  %v1064_v36 = vld [vmem:[%s1407_s9 + $0xc] ss:$20 sps:$4 sm:$0xff]   ;;  %574 = vmatprep.mubr.bf16.mxu0 %v1061_v33  ;;  %v1069_v41 = vld [vmem:[%s1407_s9 + $0x10] ss:$20 sps:$4 sm:$0xff]  }
  0x66   : > { %615 = vmatprep.mubr.bf16.mxu1 %v1064_v36  ;;  %v1067_v39 = vld [vmem:[#allocation5 + $0x110] sm:$0xff]   ;;  %v1068_v40 = vld [vmem:[#allocation5 + $0x118] sm:$0xff]  }
  0x67   : > { %900 = vmatpush3.bf16.msra.mxu0 %v1041_v14 }
  0x68   : > { %922 = vmatpush3.bf16.msra.mxu1 %v1042_v15  ;;  %901 = vmatprep.subr.bf16.mxu0 %v1043_v16 }
  0x69   : > { %923 = vmatprep.subr.bf16.mxu1 %v1044_v17 }
  0x6b   : > { %902 = vmatpush3.bf16.msra.mxu0 %v1045_v18 }
  0x6c   : > { %924 = vmatpush3.bf16.msra.mxu1 %v1046_v19  ;;  %903 = vmatprep.subr.bf16.mxu0 %v1047_v20 }
  0x6d   : > { %925 = vmatprep.subr.bf16.mxu1 %v1048_v21 }
  0x6f   : > { %904 = vmatpush3.bf16.msra.mxu0 %v1049_v22 }
  0x70   : > { %926 = vmatpush3.bf16.msra.mxu1 %v1050_v23  ;;  %905 = vmatprep.subr.bf16.mxu0 %v1051_v24 }
  0x71   : > { %927 = vmatprep.subr.bf16.mxu1 %v1052_v25 }
  0x73   : > { %906 = vmatpush3.bf16.msra.mxu0 %v1053_v26 }
  0x74   : > { %928 = vmatpush3.bf16.msra.mxu1 %v1054_v27  ;;  %907 = vmatprep.subr.bf16.mxu0 %v1055_v28 }
  0x75   : > { %929 = vmatprep.subr.bf16.mxu1 %v1056_v29 }
  0x77   : > { %908 = vmatpush3.bf16.msra.mxu0 %v1057_v30 }
  0x78   : > { %930 = vmatpush3.bf16.msra.mxu1 %v1058_v31  ;;  %942 = vmatprep.subr.bf16.mxu0 %v1238_v34 }
  0x7a   : > { %575 = vmatmul.mubr.bf16.vlgmr.msra.gmra.mrb[0].mxu0 %v1059_v32 }
  0x7b   : > { %616 = vmatmul.mubr.bf16.vlgmr.msra.gmra.mrb[0].mxu1 %v1062_v35  ;;  %943 = vmatpush3.bf16.msra.mxu0 %v1065_v37 }
  0x7c   : > { %944 = vmatprep.subr.bf16.mxu0 %v1238_v34  ;;  %950 = vmatprep.mubr.msk.bf16.mxu0 %vm1239_vm0, %v1238_v34 }
  0x7f   : > { %945 = vmatpush3.bf16.msra.mxu0 %v1066_v38 }
  0x80   : > { %946 = vmatprep.subr.bf16.mxu0 %v1238_v34 }
  0x83   : > { %947 = vmatpush3.bf16.msra.mxu0 %v1067_v39 }
  0x84   : > { %948 = vmatprep.subr.bf16.mxu0 %v1238_v34 }
  0x87   : > { %949 = vmatpush3.bf16.msra.mxu0 %v1068_v40 }
  0x8a   : > { %951 = vmatmul.mubr.msk.bf16.vlgmr.msra.gmra.mrb[4].mxu0 %vm538_vm1, %v1069_v41 }
 0x14d   : > { %v909_v42 = vpop.f32.mrb[0].mxu0 }
 0x14e   : > { %v931_v43 = vpop.f32.mrb[0].mxu1  ;;  %v910_v44 = vpop.f32.mrb[1].mxu0 }
 0x14f   : > { %v911_v45 = vadd.f32 %v910_v44, %v909_v42  ;;  %v932_v46 = vpop.f32.mrb[1].mxu1  ;;  %v912_v47 = vpop.f32.mrb[2].mxu0 }
 0x150   : > { %v933_v48 = vadd.f32 %v932_v46, %v931_v43  ;;  %v934_v49 = vpop.f32.mrb[2].mxu1  ;;  %v913_v50 = vpop.f32.mrb[3].mxu0 }
 0x151   : > { %v914_v51 = vadd.f32 %v913_v50, %v912_v47  ;;  %v935_v52 = vpop.f32.mrb[3].mxu1 }
 0x152   : > { %v936_v53 = vadd.f32 %v935_v52, %v934_v49  ;;  %v618_v54 = vadd.f32 %v933_v48, %v911_v45 }
 0x154   : > { %v621_v55 = vadd.f32 %v936_v53, %v914_v51 }
 0x15d   : > { %v658_v56 = vpop.f32.mrb[4].mxu0 }
 0x15e   : > { %v659_v57 = vadd.f32 %v658_v56, %v618_v54  ;;  %v952_v58 = vpop.f32.mrb[5].mxu0 }
 0x15f   : > { %v661_v59 = vpop.f32.mrb[6].mxu0 }
 0x160   : > { %665 = vst [vmem:[%s208_s20] sm:$0xff] %v659_v57  ;;  %v662_v60 = vadd.f32 %v661_v59, %v621_v55  ;;  %v953_v61 = vpop.f32.mrb[7].mxu0  ;;  %v675_v62 = vmul.f32 %v659_v57, %v659_v57 }
 0x162   : > { %666 = vst [vmem:[%s208_s20 + $0x8] sm:$0xff] %v662_v60  ;;  %v667_v63 = vadd.f32 %v662_v60, %v659_v57  ;;  %v676_v0 = vmul.f32 %v662_v60, %v662_v60 }
 0x163   : > { %1141 = shalt.err (!%p1138_p7)
}
 0x164   : > { %s1142_s30 = scalar_lea.hbm %s1429_s10, 256  ;;  %s1146_s8 = scalar_lea.hbm %s1506_s2, 512 }
 0x165   : > { %p1143_p9 = scmp.ne.s32.totalorder %s1429_s10, %s1142_s30  ;;  %p1147_p5 = scmp.lt.u32.totalorder %s1429_s10, %s1506_s2 }
 0x166   : > { %p1148_p11 = scmp.lt.u32.totalorder %s1146_s8, %s1142_s30  ;;  %p1150_p4 = scmp.lt.u32.totalorder %s1142_s30, %s1429_s10 }
 0x167   : > { %p1144_p2 = pnand %p1143_p9, %p1355_p12 }
 0x168   : > { %p1149_p1 = por %p1148_p11, %p1147_p5 }
 0x169   : > { %p1145_p0 = pneg %p1144_p2 }
 0x16a   : > { %p1151_p6 = por %p1150_p4, %p1149_p1 }
 0x16c   : > { %p1152_p8 = pnand %p1151_p6, %p1145_p0 }
 0x16e   : > { %1155 = shalt.err (!%p1152_p8)
}
 0x16f   : > { %s1241_s20 = smov 128   ;;  %s1242_s22 = smov 8   ;;  %v668_v1 = vrot.slane %v667_v63, 4  ;;  %v677_v2 = vadd.f32 %v676_v0, %v675_v62 }
 0x170   : > { %963 = dma.vmem_to_hbm [thread:$0]  (%p1355_p12), %s1424_s4, 256, %s1429_s10, %s686_s11, %s1241_s20, %s1241_s20, %s1242_s22  }
 0x171   : > { %v669_v3 = vadd.f32 %v668_v1, %v667_v63  ;;  %v678_v4 = vrot.slane %v677_v2, 4  ;;  %s842_s26 = sshll.u32 %s1403_s6, 1  ;;  %s889_s5 = sshll.u32 %s1285_s16, 5 }
 0x172   : > { %s215_s27 = scalar_lea.vmem [#allocation8], %s842_s26  ;;  %s1460_s11 = scalar_lea.hbm %s1507_s3, %s889_s5 }
 0x173   : > { %v670_v5 = vrot.slane %v669_v3, 2  ;;  %v679_v6 = vadd.f32 %v678_v4, %v677_v2  ;;  %s720_s28 = sshll.u32 %s215_s27, 4  ;;  %s691_s29 = scalar_lea.sflag [#allocation9], %s1403_s6  ;;  %s1462_s28 = int_to_ptr.vmem [resolvable:$true] %s720_s28 }
 0x174   : > { %s1156_s23 = scalar_lea.vmem %s1462_s28, 32  ;;  %s1243_s16 = smov [#allocation8]  }
 0x175   : > { %v671_v7 = vadd.f32 %v670_v5, %v669_v3  ;;  %v680_v8 = vrot.slane %v679_v6, 2  ;;  %p1157_p10 = scmp.ne.s32.totalorder %s1462_s28, %s1156_s23  ;;  %s1160_s30 = sshll.u32 %s1243_s16, 4  ;;  %s1161_s30 = int_to_ptr.vmem [resolvable:$false] %s1160_s30 }
 0x176   : > { %s1162_s25 = scalar_lea.vmem %s1161_s30, 64  ;;  %p1163_p7 = scmp.lt.s32.totalorder %s1462_s28, %s1161_s30 }
 0x177   : > { %v672_v9 = vrot.slane %v671_v7, 1  ;;  %v681_v10 = vadd.f32 %v680_v8, %v679_v6  ;;  %p1158_p13 = pnand %p1157_p10, %p1355_p12  ;;  %p1164_p9 = scmp.lt.s32.totalorder %s1162_s25, %s1156_s23 }
 0x179   : > { %v673_v11 = vadd.f32 %v672_v9, %v671_v7  ;;  %v682_v12 = vrot.slane %v681_v10, 1  ;;  %p1159_p3 = pneg %p1158_p13  ;;  %p1165_p2 = por %p1164_p9, %p1163_p7 }
 0x17b   : > { %674 = vst [vmem:[%s215_s27] sm:$0x1] %v673_v11  ;;  %v683_v13 = vadd.f32 %v682_v12, %v681_v10  ;;  %p1166_p0 = pnand %p1165_p2, %p1159_p3 }
 0x17d   : > { %684 = vst [vmem:[%s215_s27 + $0x1] sm:$0x1] %v683_v13 }
 0x17e   : > { %1169 = shalt.err (!%p1166_p0)
}
 0x17f   : > { %s1170_s6 = scalar_lea.hbm %s1460_s11, 32  ;;  %s1174_s9 = scalar_lea.hbm %s1507_s3, 64 }
 0x180   : > { %p1171_p5 = scmp.ne.s32.totalorder %s1460_s11, %s1170_s6  ;;  %p1175_p4 = scmp.lt.u32.totalorder %s1460_s11, %s1507_s3 }
 0x181   : > { %p1176_p6 = scmp.lt.u32.totalorder %s1174_s9, %s1170_s6  ;;  %p1178_p10 = scmp.lt.u32.totalorder %s1170_s6, %s1460_s11 }
 0x182   : > { %p1172_p11 = pnand %p1171_p5, %p1355_p12 }
 0x183   : > { %p1177_p8 = por %p1176_p6, %p1175_p4 }
 0x184   : > { %p1173_p1 = pneg %p1172_p11 }
 0x185   : > { %p1179_p13 = por %p1178_p10, %p1177_p8 }
 0x187   : > { %p1180_p3 = pnand %p1179_p13, %p1173_p1 }
 0x189   : > { %1183 = shalt.err (!%p1180_p3)
}
 0x18a   : > { %964 = dma.vmem_to_hbm [thread:$0]  (%p1355_p12), %s1462_s28, 32, %s1460_s11, %s691_s29  }
 0x18b PF: > { %s732_s22 = sand.u32 1, %s1218_s12   ;;  %p1522_p7 = scmp.ne.s32.totalorder %s1512_s19, 0 }
 0x18c   : > { %p1523_p9 = scmp.ge.s32.totalorder %s1230_s15, 2  ;;  %s733_s26 = scalar_lea.sflag [#allocation4], %s732_s22 }
 0x18e   : > { %p976_p2 = pnand %p1523_p9, %p1522_p7 }
 0x190   : > { %1209 = dma.done.wait (!%p976_p2), %s733_s26, 256  }
 0x191   : > { %1211 = vsyncadd (!%p976_p2), %s733_s26, 4294967040  ;;  %s742_s5 = scalar_lea.sflag [#allocation9], %s732_s22 }
 0x192   : > { %1213 = dma.done.wait (!%p976_p2), %s742_s5, 32  }
 0x193   : > { %1215 = vsyncadd (!%p976_p2), %s742_s5, 4294967264  ;;  %p21_p12 = scmp.ge.s32.totalorder %s1320_s24, 4   ;;  %s1524_s12 = smov %s1222_s13 }
 0x194   : > { %s1525_s13 = smov %s1226_s14  ;;  %s1526_s14 = smov %s1351_s17 }
 0x195   : > { %s1527_s15 = smov %s1320_s24  ;;  %23 = sbr.rel (!%p21_p12) target bundleno = 8 (0x8), region = 94 }
 0x19c   :  { %747 = vsyncpa [#allocation3], 1 }
 0x19d   :  { %749 = vsyncpa [#allocation3 + $0x1], 1 }
 0x19e   :  { %750 = vsyncpa [#allocation6], 1 }
 0x19f   :  { %751 = vsyncpa [#allocation4], 1 }
 0x1a0   :  { %753 = vsyncpa [#allocation4 + $0x1], 1 }
 0x1a1   :  { %754 = vsyncpa [#allocation9], 1 }
 0x1a2   :  { %756 = vsyncpa [#allocation9 + $0x1], 1 }

</bundles_post_ra>
